<compile_context>
chip_gen: v7x
topology: tpu7x:2x2x1
jax: 0.10.0
libtpu: 0.0.40
codegen_flags: <defaults>
</compile_context>

<pallas_src>
import jax
import jax.numpy as jnp
from jax.experimental import pallas as pl
from jax.experimental.pallas import tpu as pltpu

_LANE = 128
_SCALE = float(1.0 / 255.0)
# ~1M elements per block -> <=4 MiB input + 4 MiB f32 output per buffer.
_TARGET_BLOCK_ELEMS = 1 << 20
# Below this size an odd-length tensor is handled as one full-array block
# (no padding, no extra HBM pass).
_SMALL_SINGLE_BLOCK = 1 << 16


def _tensor_to_tensor_kernel(x_ref, o_ref):
    # Elementwise hot path: cast to f32 and scale [0, 255] -> [0, 1].
    o_ref[...] = x_ref[...].astype(jnp.float32) * jnp.float32(_SCALE)


def _round_up(x, m):
    return (x + m - 1) // m * m


def _launch(slab):
    """Run the kernel on a 2-D slab (rows, lanes)."""
    rows, lanes = slab.shape
    if lanes % _LANE == 0 and lanes > 0:
        default_row_tile = max(_TARGET_BLOCK_ELEMS // lanes, 8)
    else:
        default_row_tile = rows  # full-array single block (lanes == full dim)

    if rows <= default_row_tile:
        # Single block equal to the full array dims (always a legal shape).
        row_tile = rows
    else:
        # Block dims divisible by (8, 128); the last (partial) block along
        # rows is masked by Pallas, so no wrapper-side padding is needed.
        row_tile = default_row_tile
    grid = (pl.cdiv(rows, row_tile),)

    n = rows * lanes
    in_bytes = slab.dtype.itemsize
    return pl.pallas_call(
        _tensor_to_tensor_kernel,
        out_shape=jax.ShapeDtypeStruct((rows, lanes), jnp.float32),
        grid_spec=pltpu.PrefetchScalarGridSpec(
            num_scalar_prefetch=0,
            grid=grid,
            in_specs=[pl.BlockSpec((row_tile, lanes), lambda i: (i, 0))],
            out_specs=pl.BlockSpec((row_tile, lanes), lambda i: (i, 0)),
        ),
        compiler_params=pltpu.CompilerParams(
            # Parallel grid axis: shards across both TensorCores on v7x.
            dimension_semantics=("parallel",),
            # v5e's scoped-VMEM default is 16 MiB; raise it so ~1M-element
            # blocks double-buffer safely on every generation (<= 32 MiB).
            vmem_limit_bytes=32 << 20,
        ),
        cost_estimate=pl.CostEstimate(
            flops=n, transcendentals=0, bytes_accessed=n * in_bytes + n * 4
        ),
    )(slab)


def tensor_to_tensor(img):
    """Pallas implementation of TensorToTensor.forward.

    Accepts any shape / dtype; returns float32 of the same shape with values
    scaled by 1/255.
    """
    orig_shape = img.shape
    n = img.size
    if n == 0:
        return jnp.zeros(orig_shape, jnp.float32)

    flat = img.reshape((n,))

    # Pick the widest lane width that divides n exactly so NO padding (and
    # hence no extra HBM pass over the tensor) is needed. NCHW image tensors
    # essentially always hit this path.
    for lanes in (1024, 512, 256, 128):
        if n % lanes == 0:
            out = _launch(flat.reshape((n // lanes, lanes)))
            return out.reshape(orig_shape)

    # n not a multiple of 128.
    if n <= _SMALL_SINGLE_BLOCK:
        # Small tensor: single full-array block (block_shape == array dims is
        # always legal), no padding, no extra copies.
        out = _launch(flat.reshape((1, n)))
        return out.reshape(orig_shape)

    # Large odd-sized tensor: pad by at most 127 elements to reach a
    # lane-dense slab.
    # TODO(synk): this uncommon path still materializes one padded copy.
    n_pad = _round_up(n, _LANE)
    padded = jnp.pad(flat, (0, n_pad - n))
    out = _launch(padded.reshape((n_pad // _LANE, _LANE)))
    return out.reshape((n_pad,))[:n].reshape(orig_shape)


if __name__ == "__main__":
    key = jax.random.PRNGKey(0)

    # Typical image tensor: NCHW uint8 in [0, 255].
    x_u8 = jax.random.randint(key, (2, 4, 16, 16), 0, 256, dtype=jnp.int32).astype(
        jnp.uint8
    )
    y = tensor_to_tensor(x_u8)
    jax.block_until_ready(y)
    ref = x_u8.astype(jnp.float32) / 255.0
    assert y.dtype == jnp.float32
    assert y.shape == x_u8.shape
    # Multiply-by-reciprocal may differ from a true divide by at most 1 ulp.
    assert jnp.allclose(y, ref, rtol=1e-6, atol=1e-7)

    # "Already float32" branch (still scales by 1/255).
    x_f32 = jax.random.uniform(key, (2, 4, 16, 16), jnp.float32) * 255.0
    y2 = tensor_to_tensor(x_f32)
    jax.block_until_ready(y2)
    assert jnp.allclose(y2, x_f32 / 255.0, rtol=1e-6, atol=1e-7)

    # Size not a multiple of 128: exercises the no-pad single-block path.
    x_odd = jax.random.randint(key, (3, 5, 7), 0, 256, dtype=jnp.int32).astype(
        jnp.uint8
    )
    y3 = tensor_to_tensor(x_odd)
    jax.block_until_ready(y3)
    assert y3.dtype == jnp.float32
    assert y3.shape == x_odd.shape
    assert jnp.allclose(y3, x_odd.astype(jnp.float32) / 255.0, rtol=1e-6, atol=1e-7)

    print("KERNEL_OK")
</pallas_src>

<mosaic_0001>
module attributes {stable_mosaic.version = 11 : i64} {
  func.func @_tensor_to_tensor_kernel(%arg0: i32, %arg1: memref<2x1024xi8, #tpu.memory_space<vmem>>, %arg2: memref<2x1024xf32, #tpu.memory_space<vmem>>) attributes {dimension_semantics = [#tpu.dimension_semantics<parallel>], iteration_bounds = array<i64: 1>, scalar_prefetch = 0 : i64, scratch_operands = 0 : i64, tpu.core_type = #tpu.core_type<tc>, window_params = [{transform_indices = @transform_0, window_bounds = array<i64: 2, 1024>}, {transform_indices = @transform_1, window_bounds = array<i64: 2, 1024>}]} {
    %c0 = arith.constant 0 : index
    %c0_0 = arith.constant 0 : index
    %0 = vector.load %arg1[%c0, %c0_0] : memref<2x1024xi8, #tpu.memory_space<vmem>>, vector<2x1024xi8>
    %1 = arith.uitofp %0 : vector<2x1024xi8> to vector<2x1024xf32>
    %cst = arith.constant 0.00392156886 : f32
    %2 = vector.broadcast %cst : f32 to vector<2x1024xf32>
    %3 = arith.mulf %1, %2 : vector<2x1024xf32>
    %c0_1 = arith.constant 0 : index
    %c0_2 = arith.constant 0 : index
    %4 = vector.load %arg2[%c0_1, %c0_2] : memref<2x1024xf32, #tpu.memory_space<vmem>>, vector<2x1024xf32>
    tpu.vector_store %arg2[%c0_1, %c0_2], %3 {strides = array<i32>} : memref<2x1024xf32, #tpu.memory_space<vmem>>, vector<2x1024xf32>,
    return
  }
  func.func @transform_0(%arg0: i32) -> (i32, i32) {
    %c0_i32 = arith.constant 0 : i32
    %c0_i32_0 = arith.constant 0 : i32
    return %arg0, %c0_i32 : i32, i32
  }
  func.func @transform_1(%arg0: i32) -> (i32, i32) {
    %c0_i32 = arith.constant 0 : i32
    %c0_i32_0 = arith.constant 0 : i32
    return %arg0, %c0_i32 : i32, i32
  }
}

</mosaic_0001>

<bundles_post_ra>
// kernel: tpu_custom_call.1
= control target key start
LH: loop header
LB: loop body
LE: loop exit
PB: predicated region body
PF: predicated region fallthrough
CT: control target
= control target key end

     0   :  { %6 = vsyncpa [#allocation3], 0  ;;  %s179_s0 = inlined_call_operand.hbm [shape: u8[2,1024], index: 0, kind: input, shape index: {}]   ;;  %s180_s1 = inlined_call_operand.hbm [shape: f32[2,1024], index: 1, kind: output, shape index: {}]  }
   0x1   :  { %7 = vsyncpa [#allocation4], 0  ;;  %s142_s6 = smov [#allocation2]   ;;  %s94_s10 = scalar_lea.hbm %s179_s0, 128 }
   0x2   :  { %s14_s7 = sshll.u32 %s142_s6, 4  ;;  %p95_p0 = scmp.ne.s32.totalorder %s179_s0, %s94_s10  ;;  %s15_s7 = int_to_ptr.vmem [resolvable:$true] %s14_s7 }
   0x3   :  { %p98_p1 = scmp.lt.u32.totalorder %s94_s10, %s179_s0 }
   0x5   :  { %p100_p2 = pnand %p98_p1, %p95_p0 }
   0x7   :  { %103 = shalt.err (!%p100_p2)
}
   0x8   :  { %s104_s15 = scalar_lea.vmem %s15_s7, 128  ;;  %p109_p4 = scmp.lt.s32.totalorder %s15_s7, %s15_s7 }
   0x9   :  { %p105_p3 = scmp.ne.s32.totalorder %s15_s7, %s104_s15  ;;  %p110_p5 = scmp.lt.s32.totalorder %s104_s15, %s104_s15 }
   0xb   :  { %p111_p6 = por %p110_p5, %p109_p4 }
   0xd   :  { %p112_p7 = pnand %p111_p6, %p105_p3 }
   0xf   :  { %115 = shalt.err (!%p112_p7)
}
  0x10   :  { %17 = dma.hbm_to_vmem [thread:$0]  %s179_s0, 128, %s15_s7, [#allocation3]  }
  0x11   :  { %138 = dma.done.wait [#allocation3], 128  }
  0x12   :  { %139 = vsyncadd [#allocation3], 4294967168  ;;  %v143_v0 = vmov 1983009808   ;;  %v45_v2 = vlaneseq  ;;  %v21_v3 = vld [vmem:[#allocation2] sm:$0xff]  ;;  %s144_s0 = smov [#allocation5]  }
  0x13   :  { %v43_v1 = vunpack.c.l.s4 %v143_v0  ;;  %v22_v6 = vunpack.c.0.s8 %v21_v3  ;;  %v23_v7 = vunpack.c.1.s8 %v21_v3  ;;  %v24_v8 = vunpack.c.2.s8 %v21_v3  ;;  %s82_s18 = sshll.u32 %s144_s0, 4  ;;  %s83_s18 = int_to_ptr.vmem [resolvable:$true] %s82_s18 }
  0x14   :  { %v46_v5 = vshrl.u32 %v45_v2, 7  ;;  %v25_v9 = vunpack.c.3.s8 %v21_v3  ;;  %s116_s19 = scalar_lea.vmem %s83_s18, 256  ;;  %p121_p9 = scmp.lt.s32.totalorder %s83_s18, %s83_s18 }
  0x15   :  { %v44_v4 = vunpack.c.0.s8 %v43_v1  ;;  %v26_v10 = vand.u32 255, %v22_v6  ;;  %v27_v11 = vand.u32 255, %v23_v7  ;;  %v28_v12 = vand.u32 255, %v24_v8  ;;  %p117_p8 = scmp.ne.s32.totalorder %s83_s18, %s116_s19  ;;  %p122_p10 = scmp.lt.s32.totalorder %s116_s19, %s116_s19 }
  0x16   :  { %v29_v13 = vand.u32 255, %v25_v9 }
  0x17   :  { %v47_v14 = vsub.s32 %v44_v4, %v46_v5  ;;  %v30_v15 = vcvt.s32.f32 %v26_v10  ;;  %v31_v16 = vcvt.s32.f32 %v27_v11  ;;  %v32_v17 = vcvt.s32.f32 %v28_v12  ;;  %p123_p11 = por %p122_p10, %p121_p9 }
  0x18   :  { %v33_v18 = vcvt.s32.f32 %v29_v13 }
  0x19   :  { %v34_v19 = vmul.f32 0.003921569, %v30_v15  ;;  %v35_v20 = vmul.f32 0.003921569, %v31_v16  ;;  %v36_v21 = vmul.f32 0.003921569, %v32_v17  ;;  %p124_p12 = pnand %p123_p11, %p117_p8 }
  0x1a   :  { %v37_v22 = vmul.f32 0.003921569, %v33_v18 }
  0x1b   :  { %v48_v23 = vrot.slane %v34_v19, %v47_v14  ;;  %v55_v24 = vrot.slane %v35_v20, %v47_v14  ;;  %v63_v25 = vrot.slane %v36_v21, %v47_v14 }
  0x1c   :  { %v70_v26 = vrot.slane %v37_v22, %v47_v14 }
  0x1d   :  { %v56_v27 = vcombine.low %v48_v23, %v55_v24 }
  0x1e   :  { %v71_v28 = vcombine.low %v63_v25, %v70_v26 }
  0x1f   :  { %74 = vst [vmem:[#allocation5] sm:$0xff] %v56_v27 }
  0x20   :  { %75 = vst [vmem:[#allocation5 + $0x8] sm:$0xff] %v71_v28 }
  0x21   :  { %127 = shalt.err (!%p124_p12)
}
  0x22   :  { %s128_s22 = scalar_lea.hbm %s180_s1, 256 }
  0x23   :  { %p129_p13 = scmp.ne.s32.totalorder %s180_s1, %s128_s22  ;;  %p132_p0 = scmp.lt.u32.totalorder %s128_s22, %s180_s1 }
  0x25   :  { %p134_p1 = pnand %p132_p0, %p129_p13 }
  0x27   :  { %137 = shalt.err (!%p134_p1)
}
  0x28   :  { %85 = dma.vmem_to_hbm [thread:$0]  %s83_s18, 256, %s180_s1, [#allocation4]  }
  0x29   :  { %140 = dma.done.wait [#allocation4], 256  }
  0x2a   :  { %141 = vsyncadd [#allocation4], 4294967040 }
  0x2b   :  { %89 = vsyncpa [#allocation3], 1 }
  0x2c   :  { %90 = vsyncpa [#allocation4], 1 }

</bundles_post_ra>
